<compile_context>
chip_gen: v5e
topology: v5e:2x2
jax: 0.10.0
libtpu: 0.0.40
codegen_flags: <defaults>
</compile_context>

<pallas_src>
import jax
import jax.numpy as jnp
from jax.experimental import pallas as pl
from jax.experimental.pallas import tpu as pltpu


def _conv1x1_vpu_kernel(w_ref, b_ref, x_ref, o_ref):
    # w_ref: VMEM (C, 1)  f32 conv weight column (same block every step)
    # b_ref: SMEM (1,)    f32 conv bias
    # x_ref: VMEM (C, t)  pixel tile (batch dim squeezed), channels on sublanes
    # o_ref: VMEM (1, t)  output tile (lane-dense)
    prod = x_ref[...] * w_ref[...]                      # VALU: full-tile mul, lane-bcast w
    red = jnp.sum(prod, axis=0, keepdims=True)          # XLU: channel (sublane) reduce
    o_ref[...] = (red + b_ref[0]).astype(o_ref.dtype)


def _conv1x1_mxu_kernel(w_ref, b_ref, x_ref, o_ref):
    # w_ref: VMEM (1, C)  f32 conv weight (same block every step)
    # b_ref: SMEM (1,)    f32 conv bias
    # x_ref: VMEM (C, t)  pixel tile
    # o_ref: VMEM (1, t)  output tile
    o_ref[...] = (
        jnp.dot(w_ref[...], x_ref[...], preferred_element_type=jnp.float32)
        + b_ref[0]
    ).astype(o_ref.dtype)


def _choose_pixel_tile(hw, c, tile_bytes):
    """Largest legal pixel tile fitting the per-buffer byte budget.

    Full H*W if it fits (full extent is always a legal last dim), otherwise a
    multiple of 128 (lane width).
    """
    per_px_bytes = (c + 1) * 4            # C input floats + 1 output float per pixel
    budget = max(128, tile_bytes // per_px_bytes)
    if hw <= budget:
        return hw
    return max(128, (budget // 128) * 128)


def linear_classifier_forward(x, weight, bias, *, tile_bytes=8 << 20, vpu_c_max=32):
    """Forward pass of LinearClassifier (features modeled as identity).

    Args:
      x:          (N, C, H, W) float input, NCHW like the PyTorch module.
      weight:     (1, C, 1, 1) Conv2d(latent_dim, 1, 1) weight.
      bias:       (1,) Conv2d bias.
      tile_bytes: target bytes per (input + output) pixel-tile set (tuning knob).
      vpu_c_max:  channel threshold below which the VPU/XLU path is used.

    Returns:
      y: (N, 1, H, W) float32.
    """
    N, C, H, W = x.shape
    HW = H * W

    # features(x) modeled as identity.
    z3 = x.astype(jnp.float32).reshape(N, C, HW)    # free reshape, no transpose
    b1 = bias.reshape(1).astype(jnp.float32)

    t_hw = _choose_pixel_tile(HW, C, tile_bytes)
    grid = (N, pl.cdiv(HW, t_hw))

    if C <= vpu_c_max:
        kernel = _conv1x1_vpu_kernel
        w_arg = weight.reshape(C, 1).astype(jnp.float32)
        w_spec = pl.BlockSpec((C, 1), lambda n, i: (0, 0))      # constant block
    else:
        kernel = _conv1x1_mxu_kernel
        w_arg = weight.reshape(1, C).astype(jnp.float32)
        w_spec = pl.BlockSpec((1, C), lambda n, i: (0, 0))      # constant block

    # VMEM budget: double-buffered (input + output) tile sets + weight + headroom.
    tile_set_bytes = (C + 1) * t_hw * 4
    vmem_need = 2 * tile_set_bytes + 2 * C * 4 + (2 << 20)
    vmem_limit = int(min(max(vmem_need, 16 << 20), 40 << 20))

    y3 = pl.pallas_call(
        kernel,
        out_shape=jax.ShapeDtypeStruct((N, 1, HW), jnp.float32),
        grid_spec=pltpu.PrefetchScalarGridSpec(
            num_scalar_prefetch=0,
            grid=grid,
            in_specs=[
                w_spec,                                               # weight
                pl.BlockSpec(memory_space=pltpu.MemorySpace.SMEM),    # bias
                pl.BlockSpec((pl.Squeezed(), C, t_hw),
                             lambda n, i: (n, 0, i)),                 # pixel tile
            ],
            out_specs=pl.BlockSpec((pl.Squeezed(), 1, t_hw),
                                   lambda n, i: (n, 0, i)),
        ),
        compiler_params=pltpu.CompilerParams(
            dimension_semantics=("parallel", "parallel"),
            vmem_limit_bytes=vmem_limit,
        ),
    )(w_arg, b1, z3)

    return y3.reshape(N, 1, H, W)


def _reference(x, weight, bias):
    C = x.shape[1]
    y = jnp.einsum("nchw,c->nhw", x.astype(jnp.float32),
                   weight.reshape(C).astype(jnp.float32)) + bias[0]
    return y[:, None, :, :]


if __name__ == "__main__":
    key = jax.random.PRNGKey(0)
    kx, kw, kb, kx2, kx3, kw3, kb3 = jax.random.split(key, 7)

    # 1) Small-C VPU/XLU path, single pixel tile per image.
    N, C, H, W = 2, 4, 16, 16   # latent_dim = C = 4
    x = jax.random.normal(kx, (N, C, H, W), dtype=jnp.float32)
    weight = jax.random.normal(kw, (1, C, 1, 1), dtype=jnp.float32) * 0.1
    bias = jax.random.normal(kb, (1,), dtype=jnp.float32) * 0.1

    y = jax.block_until_ready(linear_classifier_forward(x, weight, bias))
    assert y.shape == (N, 1, H, W)
    assert jnp.allclose(y, _reference(x, weight, bias), atol=1e-5, rtol=1e-5)

    # 2) Tiled small-C path (multiple pixel tiles per image).
    x2 = jax.random.normal(kx2, (2, C, 32, 32), dtype=jnp.float32)
    y2 = jax.block_until_ready(
        linear_classifier_forward(x2, weight, bias, tile_bytes=4096))
    assert y2.shape == (2, 1, 32, 32)
    assert jnp.allclose(y2, _reference(x2, weight, bias), atol=1e-5, rtol=1e-5)

    # 3) Larger-C MXU path.
    C3 = 64
    x3 = jax.random.normal(kx3, (2, C3, 16, 16), dtype=jnp.float32)
    w3 = jax.random.normal(kw3, (1, C3, 1, 1), dtype=jnp.float32) * 0.1
    b3 = jax.random.normal(kb3, (1,), dtype=jnp.float32) * 0.1
    y3 = jax.block_until_ready(linear_classifier_forward(x3, w3, b3))
    assert y3.shape == (2, 1, 16, 16)
    assert jnp.allclose(y3, _reference(x3, w3, b3), atol=1e-4, rtol=1e-4)

    print("KERNEL_OK")
</pallas_src>

<mosaic_0001>
module attributes {stable_mosaic.version = 11 : i64} {
  func.func @_conv1x1_vpu_kernel(%arg0: i32, %arg1: i32, %arg2: memref<4x1xf32, #tpu.memory_space<vmem>>, %arg3: memref<1xf32, #tpu.memory_space<smem>>, %arg4: memref<1x4x256xf32, #tpu.memory_space<vmem>>, %arg5: memref<1x1x256xf32, #tpu.memory_space<vmem>>) attributes {dimension_semantics = [#tpu.dimension_semantics<parallel>, #tpu.dimension_semantics<parallel>], iteration_bounds = array<i64: 2, 1>, scalar_prefetch = 0 : i64, scratch_operands = 0 : i64, tpu.core_type = #tpu.core_type<tc>, window_params = [{pipeline_mode = #tpu.pipeline_mode<synchronous>, transform_indices = @transform_0, window_bounds = array<i64: 4, 1>}, {transform_indices = @transform_1, window_bounds = array<i64: 1>}, {transform_indices = @transform_2, window_bounds = array<i64: 1, 4, 256>}, {transform_indices = @transform_3, window_bounds = array<i64: 1, 1, 256>}]} {
    %c0 = arith.constant 0 : index
    %c0_0 = arith.constant 0 : index
    %c0_1 = arith.constant 0 : index
    %0 = vector.load %arg4[%c0, %c0_0, %c0_1] : memref<1x4x256xf32, #tpu.memory_space<vmem>>, vector<1x4x256xf32>
    %1 = vector.shape_cast %0 : vector<1x4x256xf32> to vector<4x256xf32>
    %c0_2 = arith.constant 0 : index
    %c0_3 = arith.constant 0 : index
    %2 = vector.load %arg2[%c0_2, %c0_3] : memref<4x1xf32, #tpu.memory_space<vmem>>, vector<4x1xf32>
    %3 = vector.broadcast %2 : vector<4x1xf32> to vector<4x256xf32>
    %4 = arith.mulf %1, %3 : vector<4x256xf32>
    %cst = arith.constant dense<0.000000e+00> : vector<256xf32>
    %5 = vector.multi_reduction <add>, %4, %cst [0] : vector<4x256xf32> to vector<256xf32>
    %6 = vector.shape_cast %5 : vector<256xf32> to vector<1x256xf32>
    %c0_4 = arith.constant 0 : index
    %7 = memref.load %arg3[%c0_4] : memref<1xf32, #tpu.memory_space<smem>>
    %8 = vector.broadcast %7 : f32 to vector<1x256xf32>
    %9 = arith.addf %6, %8 : vector<1x256xf32>
    %c0_5 = arith.constant 0 : index
    %c0_6 = arith.constant 0 : index
    %c0_7 = arith.constant 0 : index
    %10 = vector.load %arg5[%c0_5, %c0_6, %c0_7] : memref<1x1x256xf32, #tpu.memory_space<vmem>>, vector<1x1x256xf32>
    %11 = vector.shape_cast %10 : vector<1x1x256xf32> to vector<1x256xf32>
    %12 = vector.shape_cast %9 : vector<1x256xf32> to vector<1x1x256xf32>
    tpu.vector_store %arg5[%c0_5, %c0_6, %c0_7], %12 {strides = array<i32>} : memref<1x1x256xf32, #tpu.memory_space<vmem>>, vector<1x1x256xf32>,
    return
  }
  func.func @transform_0(%arg0: i32, %arg1: i32) -> (i32, i32) {
    %c0_i32 = arith.constant 0 : i32
    %c0_i32_0 = arith.constant 0 : i32
    %c0_i32_1 = arith.constant 0 : i32
    return %c0_i32, %c0_i32_0 : i32, i32
  }
  func.func @transform_1(%arg0: i32, %arg1: i32) -> i32 {
    %c0_i32 = arith.constant 0 : i32
    %c0_i32_0 = arith.constant 0 : i32
    return %c0_i32 : i32
  }
  func.func @transform_2(%arg0: i32, %arg1: i32) -> (i32, i32, i32) {
    %c0_i32 = arith.constant 0 : i32
    %c0_i32_0 = arith.constant 0 : i32
    return %arg0, %c0_i32, %arg1 : i32, i32, i32
  }
  func.func @transform_3(%arg0: i32, %arg1: i32) -> (i32, i32, i32) {
    %c0_i32 = arith.constant 0 : i32
    %c0_i32_0 = arith.constant 0 : i32
    return %arg0, %c0_i32, %arg1 : i32, i32, i32
  }
}

</mosaic_0001>

<bundles_post_ra>
// kernel: tpu_custom_call.1
= control target key start
LH: loop header
LB: loop body
LE: loop exit
PB: predicated region body
PF: predicated region fallthrough
CT: control target
= control target key end

     0   :  { %s702_s0 = inlined_call_operand.vmem [shape: f32[4,1], index: 0, kind: input, shape index: {}]   ;;  %s703_s1 = inlined_call_operand.<no memory space> [shape: f32[1], index: 1, kind: input, shape index: {}]   ;;  %s704_s2 = inlined_call_operand.hbm [shape: f32[2,4,256], index: 2, kind: input, shape index: {}]   ;;  %s705_s3 = inlined_call_operand.hbm [shape: f32[2,1,256], index: 3, kind: output, shape index: {}]  }
   0x1   :  { %8 = sst [smem:[#allocation2]] %s703_s1 }
   0x2   :  { %9 = vsyncpa [#allocation4], 0 }
   0x3   :  { %11 = vsyncpa [#allocation4 + $0x1], 0 }
   0x4   :  { %12 = vsyncpa [#allocation5], 0 }
   0x5   :  { %14 = vsyncpa [#allocation5 + $0x1], 0  ;;  %s578_s14 = smov 0   ;;  %s580_s15 = smov 0  }
   0x6   :  { %s582_s16 = smov 0   ;;  %s584_s17 = smov 0  }
   0x7   :  { %s586_s18 = smov 0   ;;  %s588_s19 = smov 0  }
   0x8 LB: > { %s359_s1 = sadd.s32 4294967295, %s551_s19   ;;  %s360_s20 = sadd.s32 4294967294, %s551_s19   ;;  %s551_s19 = sphi %s588_s19, %s20_s19   ;;  %s547_s18 = sphi %s586_s18, %s714_s18   ;;  %s543_s17 = sphi %s584_s17, %s713_s17   ;;  %s539_s16 = sphi %s582_s16, %s712_s16   ;;  %s535_s15 = sphi %s580_s15, %s711_s15   ;;  %s531_s14 = sphi %s578_s14, %s710_s14  }
   0x9   : > { %s32_s21 = sadd.s32 1, %s547_s18  ;;  %s83_s22 = sadd.s32 1, %s539_s16 }
   0xa   : > { %p34_p0 = scmp.ge.s32.totalorder %s32_s21, 2  ;;  %p90_p1 = scmp.ne.s32.totalorder %s539_s16, %s535_s15 }
   0xb   : > { %p91_p2 = scmp.eq.s32.totalorder %s551_s19, 0  ;;  %p96_p3 = scmp.ne.s32.totalorder %s535_s15, %s531_s14 }
   0xc   : > { %s716_s21 = smov (%p34_p0, %s32_s21), 0  ;;  %p97_p5 = scmp.eq.s32.totalorder %s359_s1, 0 }
   0xd   : > { %p619_p4 = por %p91_p2, %p90_p1  ;;  %s78_s24 = ssub.s32 %s547_s18, %s716_s21 }
   0xe   : > { %p122_p6 = scmp.eq.s32.totalorder %s359_s1, 1  ;;  %p81_p7 = scmp.eq.s32.totalorder %s78_s24, 0 }
   0xf   : > { %p625_p8 = por %p97_p5, %p96_p3  ;;  %p128_p10 = scmp.eq.s32.totalorder %s360_s20, 1 }
  0x10   : > { %p629_p9 = por %p122_p6, %p90_p1  ;;  %p362_p12 = scmp.ge.s32.totalorder %s551_s19, 2 }
  0x11   : > { %s634_s27 = scalar_select %p81_p7, %s539_s16, %s83_s22  }
  0x12   : > { %p636_p11 = por %p128_p10, %p96_p3  ;;  %p386_p13 = scmp.lt.s32.totalorder %s551_s19, 2 }
  0x13   : > { %s154_s29 = sand.u32 1, %s539_s16   ;;  %s373_s4 = sshll.u32 %s547_s18, 3 }
  0x14   : > { %s363_s30 = sshll.u32 %s154_s29, 3  ;;  %s165_s7 = scalar_lea.hbm %s704_s2, %s373_s4 }
  0x15   : > { %s158_s8 = scalar_lea.vmem [#allocation3], %s363_s30  ;;  %s167_s10 = sshll.u32 %s165_s7, 4  ;;  %s168_s10 = int_to_ptr.hbm [resolvable:$true] %s167_s10 }
  0x16   : > { %s169_s9 = sshll.u32 %s158_s8, 4  ;;  %p379_p0 = pnand %p386_p13, %p619_p4  ;;  %s170_s9 = int_to_ptr.vmem [resolvable:$true] %s169_s9 }
  0x17   : > { %p366_p1 = scmp.ge.s32.totalorder %s551_s19, 1  ;;  %p174_p2 = scmp.lt.s32.totalorder %s551_s19, 3 }
  0x18   : > { %s155_s11 = scalar_lea.sflag [#allocation4], %s154_s29 }
  0x19   : > { %381 = dma.hbm_to_vmem [thread:$0]  (!%p379_p0), %s168_s10, 128, %s170_s9, %s155_s11  }
  0x1a   : > { %p175_p3 = pnand %p366_p1, %p174_p2 }
  0x1b   : > { %s652_s12 = sand.u32 (!%p175_p3), 1, %s535_s15  }
  0x1c   : > { %178 = sbr.rel (%p175_p3) target bundleno = 184 (0xb8), region = 32  ;;  %s367_s13 = sshll.u32 (!%p175_p3), %s652_s12, 3 }
  0x1d   : > { %s181_s1 = scalar_lea.sflag (!%p175_p3), [#allocation4], %s652_s12  ;;  %s184_s20 = scalar_lea.vmem (!%p175_p3), [#allocation3], %s367_s13 }
  0x21   : > { %522 = dma.done.wait (%p625_p8), %s181_s1, 128  }
  0x22   : > { %524 = vsyncadd (%p625_p8), %s181_s1, 4294967168  ;;  %v553_v0 = vmov 0   ;;  %v211_v1 = vld [vmem:[%s702_s0] sm:$0xf]  ;;  %v554_v2 = vmov 839922192   ;;  %v253_v26 = vlaneseq }
  0x23   : > { %438 = vset.pattern.permute.xlu0 %v553_v0  ;;  %v217_v3 = vunpack.c.l.s4 %v554_v2  ;;  %v210_v6 = vld [vmem:[%s184_s20] sm:$0xff]  ;;  %vm228_vm0 = vcmask 1043456   ;;  %s243_s24 = sld [smem:[#allocation2]]  ;;  %s368_s25 = sshll.u32 %s652_s12, 1  ;;  %vm250_vm1 = vcmask 1040384  }
  0x24   : > { %214 = vperm.xlu0 %438, %v211_v1   ;;  %s370_s29 = sshll.u32 %s543_s17, 1  ;;  %s207_s6 = scalar_lea.vmem [#allocation6], %s368_s25  ;;  %vm255_vm2 = vcmp.lt.s32.totalorder %v253_v26, 256 }
  0x25   : > { %v218_v4 = vunpack.c.0.s8 %v217_v3  ;;  %s271_s5 = scalar_lea.hbm %s705_s3, %s370_s29  ;;  %s273_s7 = sshll.u32 %s207_s6, 4  ;;  %s274_s7 = int_to_ptr.vmem [resolvable:$true] %s273_s7 }
  0x26   : > { %s275_s8 = sshll.u32 %s271_s5, 4  ;;  %s259_s17 = scalar_lea.sflag [#allocation5], %s652_s12  ;;  %s276_s8 = int_to_ptr.hbm [resolvable:$true] %s275_s8 }
  0x27   : > { %s483_s9 = sshra.s32 %s276_s8, 4  ;;  %s489_s1 = scalar_lea.hbm %s705_s3, 4  ;;  %s484_s9 = int_to_ptr.hbm [resolvable:$true] %s483_s9 }
  0x28   : > { %s485_s10 = scalar_lea.hbm %s484_s9, 2  ;;  %p490_p7 = scmp.lt.s32.totalorder %s484_s9, %s705_s3 }
  0x29   : > { %v244_v23 = vstv %s243_s24  ;;  %p486_p4 = scmp.ne.s32.totalorder %s484_s9, %s485_s10  ;;  %p491_p8 = scmp.lt.s32.totalorder %s489_s1, %s485_s10 }
  0x2b   : > { %p487_p5 = pnand %p486_p4, %p629_p9  ;;  %p492_p10 = por %p491_p8, %p490_p7 }
  0x2d   : > { %p488_p6 = pneg %p487_p5 }
  0x2f   : > { %p493_p13 = pnand %p492_p10, %p488_p6 }
  0x96   : > { %v215_v5 = vpop.permute.xlu0 %214 }
  0x97   : > { %v219_v7 = vperm.slane %v215_v5, %v218_v4 }
  0x99   : > { %v221_v8 = vmul.f32 %v219_v7, %v210_v6 }
  0x9b   : > { %223 = vst [vmem:[#allocation1] ss:$2 sm:$0xff] %v221_v8 }
  0xa2   : > { %v224_v9 = vld.sshfl [vmem:[#allocation1] sm:$0xff pattern:$0x75316420]  ;;  %v225_v10 = vld.sshfl [vmem:[#allocation1 + $0x8] sm:$0xff pattern:$0x75316420] }
  0xa3   : > { %v229_v11 = vsel %vm228_vm0, %v224_v9, 0.0  ;;  %v236_v12 = vsel %vm228_vm0, %v225_v10, 0.0 }
  0xa4   : > { %v230_v13 = vrot.slane %v229_v11, 4  ;;  %v237_v14 = vrot.slane %v236_v12, 4 }
  0xa6   : > { %v231_v15 = vadd.f32 %v230_v13, %v229_v11  ;;  %v238_v16 = vadd.f32 %v237_v14, %v236_v12 }
  0xa8   : > { %v232_v17 = vrot.slane %v231_v15, 2  ;;  %v239_v18 = vrot.slane %v238_v16, 2 }
  0xaa   : > { %v233_v19 = vadd.f32 %v232_v17, %v231_v15  ;;  %v240_v20 = vadd.f32 %v239_v18, %v238_v16 }
  0xac   : > { %v234_v21 = vrot.slane %v233_v19, 1  ;;  %v241_v22 = vrot.slane %v240_v20, 1 }
  0xae   : > { %v235_v24 = vadd.f32 %v234_v21, %v233_v19  ;;  %v242_v25 = vadd.f32 %v241_v22, %v240_v20 }
  0xb0   : > { %v246_v27 = vadd.f32 %v244_v23, %v242_v25  ;;  %v245_v28 = vadd.f32 %v244_v23, %v235_v24 }
  0xb2   : > { %v249_v29 = vrot.slane %v246_v27, 7 }
  0xb4   : > { %v251_v30 = vsel %vm250_vm1, %v245_v28, %v249_v29 }
  0xb5   : > { %257 = vst.msk [vmem:[%s207_s6] sm:$0x3] %vm255_vm2, %v251_v30 }
  0xb6   : > { %496 = shalt.err (!%p493_p13)
}
  0xb7   : > { %376 = dma.vmem_to_hbm [thread:$0]  (%p629_p9), %s274_s7, 32, %s276_s8, %s259_s17  }
  0xb8 PF: > { %s287_s12 = sand.u32 1, %s531_s14   ;;  %p383_p0 = pnand %p362_p12, %p636_p11 }
  0xb9   : > { %s288_s23 = scalar_lea.sflag [#allocation5], %s287_s12 }
  0xba   : > { %p384_p1 = pneg %p383_p0 }
  0xbc   : > { %526 = dma.done.wait (%p384_p1), %s288_s23, 32  }
  0xbd   : > { %528 = vsyncadd (%p384_p1), %s288_s23, 4294967264  ;;  %s20_s19 = sadd.s32 1, %s551_s19   ;;  %s710_s14 = smov %s535_s15 }
  0xbe   : > { %p17_p2 = scmp.ge.s32.totalorder %s20_s19, 4   ;;  %s711_s15 = smov %s539_s16 }
  0xbf   : > { %s712_s16 = smov %s634_s27  ;;  %s713_s17 = smov %s547_s18 }
  0xc0   : > { %s714_s18 = smov %s716_s21  ;;  %19 = sbr.rel (!%p17_p2) target bundleno = 8 (0x8), region = 77 }
  0xc5   :  { %294 = vsyncpa [#allocation4], 1 }
  0xc6   :  { %296 = vsyncpa [#allocation4 + $0x1], 1 }
  0xc7   :  { %297 = vsyncpa [#allocation5], 1 }
  0xc8   :  { %299 = vsyncpa [#allocation5 + $0x1], 1 }

</bundles_post_ra>
